<compile_context>
chip_gen: v7x
topology: tpu7x:2x2x1
jax: 0.10.0
libtpu: 0.0.40
codegen_flags: <defaults>
</compile_context>

<pallas_src>
import functools

import jax
import jax.numpy as jnp
from jax.experimental import pallas as pl
from jax.experimental.pallas import tpu as pltpu


def _encoder_kernel(w_ref, b_ref, frames_ref, out_ref):
    # w_ref:      (N, K)   bf16 conv weight as dense matmul operand
    # b_ref:      (N, 1)   f32 bias (lane-broadcast on the VPU)
    # frames_ref: (K, TL)  bf16 framed signal columns (L on lanes)
    # out_ref:    (N, TL)  f32 output block, already in PyTorch (N, L) layout
    acc = jnp.dot(w_ref[...], frames_ref[...], preferred_element_type=jnp.float32)
    out_ref[...] = jnp.maximum(acc + b_ref[...], 0.0).astype(out_ref.dtype)


def _round_up(v, m):
    return ((v + m - 1) // m) * m


def _ceil_div(a, b):
    return -(-a // b)


def encoder_forward(x, weight, bias, *, stride, tile_l=2048):
    """x: (B, 1, T) f32; weight: (N, 1, K); bias: (N,). Returns (B, N, L) f32."""
    B, Cin, T = x.shape
    assert Cin == 1
    N, _, K = weight.shape
    L = (T - K) // stride + 1

    # --- tile selection --------------------------------------------------
    # Balanced L tiles, multiple of 128, capped at ~tile_l so per-step overhead
    # is amortized; if there are too few grid steps, split so both v7x
    # TensorCores get work.
    n_tiles = _ceil_div(L, tile_l)
    if B * n_tiles < 2:
        n_tiles = min(2, _ceil_div(L, 128))
    tl = _round_up(_ceil_div(L, n_tiles), 128)
    grid_l = _ceil_div(L, tl)

    # --- glue: im2col via K strided slices, in bf16, lane-dense along L ---
    sig = x[:, 0, :].astype(jnp.bfloat16)                # (B, T) bf16
    stop = (L - 1) * stride + 1
    cols = [sig[:, k:k + stop:stride] for k in range(K)]
    frames = jnp.stack(cols, axis=1)                     # (B, K, L) bf16

    # Pad only the (cheap) bf16 frames input up to the grid extent so the
    # ragged last tile never reads unspecified data.  The f32 output is
    # emitted at its exact length; Pallas masks the last-tile store.
    L_in = grid_l * tl
    if L_in != L:
        frames = jnp.pad(frames, ((0, 0), (0, 0), (0, L_in - L)))

    w2d = weight[:, 0, :].astype(jnp.bfloat16)           # (N, K)
    b2d = bias.reshape(N, 1).astype(jnp.float32)         # (N, 1)

    out = pl.pallas_call(
        _encoder_kernel,
        out_shape=jax.ShapeDtypeStruct((B, N, L), jnp.float32),
        grid_spec=pl.GridSpec(
            grid=(B, grid_l),
            in_specs=[
                pl.BlockSpec((N, K), lambda b, l: (0, 0)),         # grid-invariant
                pl.BlockSpec((N, 1), lambda b, l: (0, 0)),         # grid-invariant
                pl.BlockSpec((None, K, tl), lambda b, l: (b, 0, l)),
            ],
            out_specs=pl.BlockSpec((None, N, tl), lambda b, l: (b, 0, l)),
        ),
        compiler_params=pltpu.CompilerParams(
            dimension_semantics=("parallel", "parallel")),
    )(w2d, b2d, frames)

    return out                                           # (B, N, L) == PyTorch NCL


if __name__ == "__main__":
    # Small, deterministic config consistent with the module
    B, T = 2, 128
    kernel_size, stride, outputDim = 16, 8, 256

    key = jax.random.PRNGKey(0)
    kx, kw, kb = jax.random.split(key, 3)

    x = jax.random.normal(kx, (B, 1, T), dtype=jnp.float32)

    # PyTorch Conv1d default init: U(-sqrt(k), sqrt(k)), k = 1/(in_ch*K)
    bound = 1.0 / jnp.sqrt(1.0 * kernel_size)
    weight = jax.random.uniform(kw, (outputDim, 1, kernel_size),
                                minval=-bound, maxval=bound, dtype=jnp.float32)
    bias = jax.random.uniform(kb, (outputDim,),
                              minval=-bound, maxval=bound, dtype=jnp.float32)

    fwd = jax.jit(functools.partial(encoder_forward, stride=stride))
    out = fwd(x, weight, bias)
    jax.block_until_ready(out)

    # Pure-JAX f32 reference (bf16 matmul operands in the kernel -> looser tol)
    L = (T - kernel_size) // stride + 1
    idx = (jnp.arange(L) * stride)[:, None] + jnp.arange(kernel_size)[None, :]
    frames_ref = x[:, 0, :][:, idx]                               # (B, L, K)
    ref = jnp.einsum("blk,nk->bnl", frames_ref, weight[:, 0, :]) + bias[None, :, None]
    ref = jnp.maximum(ref, 0.0)

    assert out.shape == (B, outputDim, L), out.shape
    err = float(jnp.max(jnp.abs(out - ref)))
    assert jnp.allclose(out, ref, atol=2e-2, rtol=2e-2), err
    print("KERNEL_OK")
</pallas_src>

<mosaic_0001>
module attributes {stable_mosaic.version = 11 : i64} {
  func.func @_encoder_kernel(%arg0: i32, %arg1: i32, %arg2: memref<256x16xbf16, #tpu.memory_space<vmem>>, %arg3: memref<256x1xf32, #tpu.memory_space<vmem>>, %arg4: memref<1x16x128xbf16, #tpu.memory_space<vmem>>, %arg5: memref<1x256x128xf32, #tpu.memory_space<vmem>>) attributes {dimension_semantics = [#tpu.dimension_semantics<parallel>, #tpu.dimension_semantics<parallel>], iteration_bounds = array<i64: 2, 1>, scalar_prefetch = 0 : i64, scratch_operands = 0 : i64, tpu.core_type = #tpu.core_type<tc>, window_params = [{pipeline_mode = #tpu.pipeline_mode<synchronous>, transform_indices = @transform_0, window_bounds = array<i64: 256, 16>}, {pipeline_mode = #tpu.pipeline_mode<synchronous>, transform_indices = @transform_1, window_bounds = array<i64: 256, 1>}, {transform_indices = @transform_2, window_bounds = array<i64: 1, 16, 128>}, {transform_indices = @transform_3, window_bounds = array<i64: 1, 256, 128>}]} {
    %c0 = arith.constant 0 : index
    %c0_0 = arith.constant 0 : index
    %0 = vector.load %arg2[%c0, %c0_0] : memref<256x16xbf16, #tpu.memory_space<vmem>>, vector<256x16xbf16>
    %c0_1 = arith.constant 0 : index
    %c0_2 = arith.constant 0 : index
    %c0_3 = arith.constant 0 : index
    %1 = vector.load %arg4[%c0_1, %c0_2, %c0_3] : memref<1x16x128xbf16, #tpu.memory_space<vmem>>, vector<1x16x128xbf16>
    %2 = vector.shape_cast %1 : vector<1x16x128xbf16> to vector<16x128xbf16>
    %cst = arith.constant dense<0.000000e+00> : vector<256x128xf32>
    %3 = tpu.matmul %0, %2, %cst {dimension_numbers = #tpu.dot_dimension_numbers<[1], [0], [0], [1], [0, 0, 1, 1], [], []>} : vector<256x16xbf16>, vector<16x128xbf16>, vector<256x128xf32> -> vector<256x128xf32>
    %c0_4 = arith.constant 0 : index
    %c0_5 = arith.constant 0 : index
    %4 = vector.load %arg3[%c0_4, %c0_5] : memref<256x1xf32, #tpu.memory_space<vmem>>, vector<256x1xf32>
    %5 = vector.broadcast %4 : vector<256x1xf32> to vector<256x128xf32>
    %6 = arith.addf %3, %5 : vector<256x128xf32>
    %cst_6 = arith.constant 0.000000e+00 : f32
    %7 = vector.broadcast %cst_6 : f32 to vector<256x128xf32>
    %8 = arith.maximumf %6, %7 : vector<256x128xf32>
    %c0_7 = arith.constant 0 : index
    %c0_8 = arith.constant 0 : index
    %c0_9 = arith.constant 0 : index
    %9 = vector.load %arg5[%c0_7, %c0_8, %c0_9] : memref<1x256x128xf32, #tpu.memory_space<vmem>>, vector<1x256x128xf32>
    %10 = vector.shape_cast %9 : vector<1x256x128xf32> to vector<256x128xf32>
    %11 = vector.shape_cast %8 : vector<256x128xf32> to vector<1x256x128xf32>
    tpu.vector_store %arg5[%c0_7, %c0_8, %c0_9], %11 {strides = array<i32>} : memref<1x256x128xf32, #tpu.memory_space<vmem>>, vector<1x256x128xf32>,
    return
  }
  func.func @transform_0(%arg0: i32, %arg1: i32) -> (i32, i32) {
    %c0_i32 = arith.constant 0 : i32
    %c0_i32_0 = arith.constant 0 : i32
    %c0_i32_1 = arith.constant 0 : i32
    return %c0_i32, %c0_i32_0 : i32, i32
  }
  func.func @transform_1(%arg0: i32, %arg1: i32) -> (i32, i32) {
    %c0_i32 = arith.constant 0 : i32
    %c0_i32_0 = arith.constant 0 : i32
    %c0_i32_1 = arith.constant 0 : i32
    return %c0_i32, %c0_i32_0 : i32, i32
  }
  func.func @transform_2(%arg0: i32, %arg1: i32) -> (i32, i32, i32) {
    %c0_i32 = arith.constant 0 : i32
    %c0_i32_0 = arith.constant 0 : i32
    return %arg0, %c0_i32, %arg1 : i32, i32, i32
  }
  func.func @transform_3(%arg0: i32, %arg1: i32) -> (i32, i32, i32) {
    %c0_i32 = arith.constant 0 : i32
    %c0_i32_0 = arith.constant 0 : i32
    return %arg0, %c0_i32, %arg1 : i32, i32, i32
  }
}

</mosaic_0001>

<bundles_post_ra>
// kernel: encoder_forward.1
= control target key start
LH: loop header
LB: loop body
LE: loop exit
PB: predicated region body
PF: predicated region fallthrough
CT: control target
= control target key end

     0   :  { %s1060_s12 = smov 0   ;;  %s1062_s13 = smov 0   ;;  %s1330_s0 = inlined_call_operand.vmem [shape: bf16[256,16], index: 0, kind: input, shape index: {}]   ;;  %s1331_s1 = inlined_call_operand.vmem [shape: f32[256,1], index: 1, kind: input, shape index: {}]   ;;  %s1332_s2 = inlined_call_operand.vmem [shape: bf16[2,16,128], index: 2, kind: input, shape index: {}]   ;;  %s1333_s3 = inlined_call_operand.vmem [shape: f32[2,256,15], index: 3, kind: output, shape index: {}]  }
   0x1   :  { %s1064_s14 = smov 0  }
   0x2 LB: > { %s25_s15 = sadd.s32 1, %s1033_s13  ;;  %p876_p0 = scmp.ge.s32.totalorder %s1037_s14, 1  ;;  %s1037_s14 = sphi %s1064_s14, %s13_s14   ;;  %s1033_s13 = sphi %s1062_s13, %s1335_s13   ;;  %s1029_s12 = sphi %s1060_s12, %s1334_s12  }
   0x3   : > { %p27_p1 = scmp.ge.s32.totalorder %s25_s15, 2  ;;  %p156_p2 = scmp.lt.s32.totalorder %s1037_s14, 3 }
   0x5   : > { %s1337_s15 = smov (%p27_p1, %s25_s15), 0  ;;  %p157_p3 = pnand %p876_p0, %p156_p2 }
   0x6   : > { %v239_v0 = vld [vmem:[%s1331_s1 + $0x10] sm:$0xff] (!%p157_p3)  ;;  %v237_v1 = vld [vmem:[%s1331_s1] sm:$0xff] (!%p157_p3)  ;;  %p186_p4 = scmp.lt.s32.totalorder (!%p157_p3), %s1029_s12, 1  ;;  %v1039_v2 = vmov (!%p157_p3), 0   ;;  %v240_v3 = vld [vmem:[%s1331_s1 + $0x18] sm:$0xff] (!%p157_p3)  ;;  %vm515_vm0 = vcmask (!%p157_p3), 130048  }
   0x7   : > { %160 = sbr.rel (%p157_p3) target bundleno = 266 (0x10a), region = 32  ;;  %997 = vset.pattern.permute.xlu1 (!%p157_p3), %v1039_v2  ;;  %996 = vset.pattern.permute.xlu0 (!%p157_p3), %v1039_v2  ;;  %v238_v4 = vld [vmem:[%s1331_s1 + $0x8] sm:$0xff] (!%p157_p3)  ;;  %v999_v5 = vld [vmem:[%s1330_s0] sm:$0xff] (!%p157_p3)   ;;  %v244_v12 = vld [vmem:[%s1331_s1 + $0x38] sm:$0xff] (!%p157_p3) }
   0x8   : > { %281 = vperm.xlu1 (!%p157_p3), %997, %v239_v0   ;;  %271 = vperm.xlu0 (!%p157_p3), %996, %v237_v1   ;;  %v1000_v6 = vld [vmem:[%s1330_s0 + $0x40] sm:$0xff] (!%p157_p3)   ;;  %v242_v8 = vld [vmem:[%s1331_s1 + $0x28] sm:$0xff] (!%p157_p3)  ;;  %v1003_v13 = vld [vmem:[%s1330_s0 + $0x10] sm:$0xff] (!%p157_p3)  }
   0x9   : > { %937 = vmatprep.mubr.msk.bf16.mxu0 (!%p157_p3), %vm515_vm0, %v999_v5  ;;  %953 = vmatprep.mubr.msk.bf16.mxu1 (!%p157_p3), %vm515_vm0, %v1000_v6  ;;  %v241_v9 = vld [vmem:[%s1331_s1 + $0x20] sm:$0xff] (!%p157_p3)  ;;  %v1001_v10 = vld [vmem:[%s1330_s0 + $0x8] sm:$0xff] (!%p157_p3)   ;;  %v1004_v14 = vld [vmem:[%s1330_s0 + $0x50] sm:$0xff] (!%p157_p3)  }
   0xa   : > { %v1002_v11 = vld [vmem:[%s1330_s0 + $0x48] sm:$0xff] (!%p157_p3)   ;;  %v243_v15 = vld [vmem:[%s1331_s1 + $0x30] sm:$0xff] (!%p157_p3)  ;;  %v245_v17 = vld [vmem:[%s1331_s1 + $0x40] sm:$0xff] (!%p157_p3) }
   0xb   : > { %v246_v16 = vld [vmem:[%s1331_s1 + $0x48] sm:$0xff] (!%p157_p3)  ;;  %v1005_v18 = vld [vmem:[%s1330_s0 + $0x18] sm:$0xff] (!%p157_p3)   ;;  %v1007_v20 = vld [vmem:[%s1330_s0 + $0x20] sm:$0xff] (!%p157_p3)  }
   0xc   : > { %286 = vperm.xlu1 (!%p157_p3), %997, %v240_v3   ;;  %276 = vperm.xlu0 (!%p157_p3), %996, %v238_v4   ;;  %v1006_v19 = vld [vmem:[%s1330_s0 + $0x58] sm:$0xff] (!%p157_p3)   ;;  %v1008_v21 = vld [vmem:[%s1330_s0 + $0x60] sm:$0xff] (!%p157_p3)   ;;  %v247_v23 = vld [vmem:[%s1331_s1 + $0x50] sm:$0xff] (!%p157_p3) }
   0xd   : > { %v248_v22 = vld [vmem:[%s1331_s1 + $0x58] sm:$0xff] (!%p157_p3)  ;;  %v250_v24 = vld [vmem:[%s1331_s1 + $0x68] sm:$0xff] (!%p157_p3)  ;;  %v249_v25 = vld [vmem:[%s1331_s1 + $0x60] sm:$0xff] (!%p157_p3) }
   0xe   : > { %s1339_s12 = smov (!%p186_p4, %s1029_s12), 1  ;;  %v1009_v26 = vld [vmem:[%s1330_s0 + $0x28] sm:$0xff]   ;;  %v1011_v28 = vld [vmem:[%s1330_s0 + $0x30] sm:$0xff]   ;;  %v252_v30 = vld [vmem:[%s1331_s1 + $0x78] sm:$0xff] }
   0xf   : > { %s916_s28 = sshll.u32 %s1339_s12, 3  ;;  %v1010_v27 = vld [vmem:[%s1330_s0 + $0x68] sm:$0xff]   ;;  %v1012_v29 = vld [vmem:[%s1330_s0 + $0x70] sm:$0xff]   ;;  %v253_v33 = vld [vmem:[%s1331_s1 + $0x80] sm:$0xff]  ;;  %s917_s24 = sshll.u32 %s1339_s12, 8 }
  0x10   : > { %s193_s4 = scalar_lea.vmem %s1332_s2, %s916_s28  ;;  %296 = vperm.xlu1 %997, %v242_v8   ;;  %291 = vperm.xlu0 %996, %v241_v9   ;;  %v251_v31 = vld [vmem:[%s1331_s1 + $0x70] sm:$0xff]  ;;  %v254_v32 = vld [vmem:[%s1331_s1 + $0x88] sm:$0xff]  ;;  %v1013_v34 = vld [vmem:[%s1330_s0 + $0x38] sm:$0xff]   ;;  %s1274_s27 = scalar_lea.vmem %s1333_s3, %s917_s24 }
  0x11   : > { %v998_v7 = vld [vmem:[%s193_s4] sm:$0xff]   ;;  %v1014_v35 = vld [vmem:[%s1330_s0 + $0x78] sm:$0xff]   ;;  %v255_v37 = vld [vmem:[%s1331_s1 + $0x90] sm:$0xff] }
  0x12   : > { %935 = vmatprep.subr.bf16.mxu0 %v998_v7  ;;  %969 = vmatprep.subr.bf16.mxu1 %v998_v7  ;;  %v256_v36 = vld [vmem:[%s1331_s1 + $0x98] sm:$0xff]  ;;  %v258_v38 = vld [vmem:[%s1331_s1 + $0xa8] sm:$0xff]  ;;  %v257_v39 = vld [vmem:[%s1331_s1 + $0xa0] sm:$0xff] }
  0x13   : > { %936 = vmatpush3.bf16.msra.mxu0 %v998_v7  ;;  %970 = vmatpush3.bf16.msra.mxu1 %v998_v7  ;;  %v260_v40 = vld [vmem:[%s1331_s1 + $0xb8] sm:$0xff]  ;;  %v259_v41 = vld [vmem:[%s1331_s1 + $0xb0] sm:$0xff]  ;;  %v262_v42 = vld [vmem:[%s1331_s1 + $0xc8] sm:$0xff] }
  0x14   : > { %306 = vperm.xlu1 %997, %v244_v12   ;;  %301 = vperm.xlu0 %996, %v243_v15   ;;  %v261_v43 = vld [vmem:[%s1331_s1 + $0xc0] sm:$0xff]  ;;  %v264_v44 = vld [vmem:[%s1331_s1 + $0xd8] sm:$0xff]  ;;  %v263_v45 = vld [vmem:[%s1331_s1 + $0xd0] sm:$0xff] }
  0x15   : > { %v266_v46 = vld [vmem:[%s1331_s1 + $0xe8] sm:$0xff]  ;;  %v265_v47 = vld [vmem:[%s1331_s1 + $0xe0] sm:$0xff]  ;;  %v268_v48 = vld [vmem:[%s1331_s1 + $0xf8] sm:$0xff] }
  0x16   : > { %938 = vmatmul.mubr.msk.bf16.vlgmr.msra.gmra.mrb[0].mxu0 %vm515_vm0, %v1001_v10  ;;  %954 = vmatmul.mubr.msk.bf16.vlgmr.msra.gmra.mrb[0].mxu1 %vm515_vm0, %v1002_v11  ;;  %v267_v49 = vld [vmem:[%s1331_s1 + $0xf0] sm:$0xff] }
  0x17   : > { %941 = vmatprep.mubr.msk.bf16.mxu0 %vm515_vm0, %v1003_v13  ;;  %957 = vmatprep.mubr.msk.bf16.mxu1 %vm515_vm0, %v1004_v14 }
  0x18   : > { %316 = vperm.xlu1 %997, %v246_v16   ;;  %311 = vperm.xlu0 %996, %v245_v17  }
  0x1c   : > { %326 = vperm.xlu1 %997, %v248_v22   ;;  %321 = vperm.xlu0 %996, %v247_v23  }
  0x1e   : > { %942 = vmatmul.mubr.msk.bf16.gmra.mrb[4].mxu0 %vm515_vm0, %v1005_v18  ;;  %958 = vmatmul.mubr.msk.bf16.gmra.mrb[4].mxu1 %vm515_vm0, %v1006_v19 }
  0x1f   : > { %945 = vmatprep.mubr.msk.bf16.mxu0 %vm515_vm0, %v1007_v20  ;;  %961 = vmatprep.mubr.msk.bf16.mxu1 %vm515_vm0, %v1008_v21 }
  0x20   : > { %336 = vperm.xlu1 %997, %v250_v24   ;;  %331 = vperm.xlu0 %996, %v249_v25  }
  0x24   : > { %346 = vperm.xlu1 %997, %v252_v30   ;;  %341 = vperm.xlu0 %996, %v251_v31  }
  0x26   : > { %946 = vmatmul.mubr.msk.bf16.gmra.mrb[8].mxu0 %vm515_vm0, %v1009_v26  ;;  %962 = vmatmul.mubr.msk.bf16.gmra.mrb[8].mxu1 %vm515_vm0, %v1010_v27 }
  0x27   : > { %949 = vmatprep.mubr.msk.bf16.mxu0 %vm515_vm0, %v1011_v28  ;;  %965 = vmatprep.mubr.msk.bf16.mxu1 %vm515_vm0, %v1012_v29 }
  0x28   : > { %356 = vperm.xlu1 %997, %v254_v32   ;;  %351 = vperm.xlu0 %996, %v253_v33  }
  0x2c   : > { %366 = vperm.xlu1 %997, %v256_v36   ;;  %361 = vperm.xlu0 %996, %v255_v37  }
  0x2e   : > { %950 = vmatmul.mubr.msk.bf16.gmra.mrb[12].mxu0 %vm515_vm0, %v1013_v34  ;;  %966 = vmatmul.mubr.msk.bf16.gmra.mrb[12].mxu1 %vm515_vm0, %v1014_v35 }
  0x30   : > { %376 = vperm.xlu1 %997, %v258_v38   ;;  %371 = vperm.xlu0 %996, %v257_v39  }
  0x34   : > { %386 = vperm.xlu1 %997, %v260_v40   ;;  %381 = vperm.xlu0 %996, %v259_v41  }
  0x38   : > { %396 = vperm.xlu1 %997, %v262_v42   ;;  %391 = vperm.xlu0 %996, %v261_v43  }
  0x3c   : > { %406 = vperm.xlu1 %997, %v264_v44   ;;  %401 = vperm.xlu0 %996, %v263_v45  }
  0x40   : > { %416 = vperm.xlu1 %997, %v266_v46   ;;  %411 = vperm.xlu0 %996, %v265_v47  }
  0x44   : > { %426 = vperm.xlu1 %997, %v268_v48   ;;  %421 = vperm.xlu0 %996, %v267_v49  }
  0x87   : > { %v282_v50 = vpop.permute.xlu1 %281  ;;  %v272_v51 = vpop.permute.xlu0 %271 }
  0x8b   : > { %v287_v52 = vpop.permute.xlu1 %286  ;;  %v277_v53 = vpop.permute.xlu0 %276 }
  0x8f   : > { %v1244_v54 = vpop.permute.xlu1 %296  ;;  %v1246_v55 = vpop.permute.xlu0 %291 }
  0x93   : > { %v1248_v56 = vpop.permute.xlu1 %306  ;;  %v302_v57 = vpop.permute.xlu0 %301 }
  0x97   : > { %v1250_v58 = vpop.permute.xlu1 %316  ;;  %v1252_v59 = vpop.permute.xlu0 %311 }
  0x9b   : > { %v1254_v60 = vpop.permute.xlu1 %326  ;;  %v1256_v61 = vpop.permute.xlu0 %321 }
  0x9f   : > { %v1258_v62 = vpop.permute.xlu1 %336  ;;  %v1260_v63 = vpop.permute.xlu0 %331 }
  0xa3   : > { %v1262_v0 = vpop.permute.xlu1 %346  ;;  %v1264_v1 = vpop.permute.xlu0 %341 }
  0xa7   : > { %v357_v2 = vpop.permute.xlu1 %356  ;;  %v352_v3 = vpop.permute.xlu0 %351 }
  0xab   : > { %v367_v4 = vpop.permute.xlu1 %366  ;;  %v362_v5 = vpop.permute.xlu0 %361 }
  0xaf   : > { %v377_v6 = vpop.permute.xlu1 %376  ;;  %v372_v7 = vpop.permute.xlu0 %371 }
  0xb3   : > { %v387_v8 = vpop.permute.xlu1 %386  ;;  %v382_v9 = vpop.permute.xlu0 %381 }
  0xb7   : > { %v1267_v10 = vpop.permute.xlu1 %396  ;;  %v1269_v11 = vpop.permute.xlu0 %391 }
  0xbb   : > { %v407_v36 = vpop.permute.xlu1 %406  ;;  %v402_v37 = vpop.permute.xlu0 %401 }
  0xe9   : > { %v939_v12 = vpop.f32.mrb[0].mxu0  ;;  %v955_v13 = vpop.f32.mrb[0].mxu1 }
  0xea   : > { %v607_v14 = vadd.f32 %v939_v12, %v282_v50  ;;  %v671_v15 = vadd.f32 %v955_v13, %v362_v5  ;;  %v598_v16 = vpop.f32.mrb[1].mxu0  ;;  %v662_v17 = vpop.f32.mrb[1].mxu1 }
  0xeb   : > { %v599_v18 = vadd.f32 %v598_v16, %v272_v51  ;;  %v663_v19 = vadd.f32 %v662_v17, %v352_v3  ;;  %v940_v20 = vpop.f32.mrb[2].mxu0  ;;  %v956_v21 = vpop.f32.mrb[2].mxu1 }
  0xec   : > { %v727_v22 = vmax.f32 %v607_v14, 0.0  ;;  %v743_v23 = vmax.f32 %v671_v15, 0.0  ;;  %v610_v24 = vadd.f32 %v940_v20, %v287_v52  ;;  %v674_v25 = vadd.f32 %v956_v21, %v367_v4  ;;  %v601_v26 = vpop.f32.mrb[3].mxu0  ;;  %v665_v27 = vpop.f32.mrb[3].mxu1 }
  0xed   : > { %v725_v28 = vmax.f32 %v599_v18, 0.0  ;;  %v741_v29 = vmax.f32 %v663_v19, 0.0  ;;  %v602_v30 = vadd.f32 %v601_v26, %v277_v53  ;;  %v666_v31 = vadd.f32 %v665_v27, %v357_v2 }
  0xee   : > { %759 = vst [vmem:[%s1274_s27 + $0x10] sm:$0xff] %v727_v22  ;;  %775 = vst [vmem:[%s1274_s27 + $0x90] sm:$0xff] %v743_v23  ;;  %v728_v32 = vmax.f32 %v610_v24, 0.0  ;;  %v744_v33 = vmax.f32 %v674_v25, 0.0 }
  0xef   : > { %757 = vst [vmem:[%s1274_s27] sm:$0xff] %v725_v28  ;;  %773 = vst [vmem:[%s1274_s27 + $0x80] sm:$0xff] %v741_v29  ;;  %v726_v34 = vmax.f32 %v602_v30, 0.0  ;;  %v742_v35 = vmax.f32 %v666_v31, 0.0 }
  0xf0   : > { %760 = vst [vmem:[%s1274_s27 + $0x18] sm:$0xff] %v728_v32  ;;  %776 = vst [vmem:[%s1274_s27 + $0x98] sm:$0xff] %v744_v33 }
  0xf1   : > { %758 = vst [vmem:[%s1274_s27 + $0x8] sm:$0xff] %v726_v34  ;;  %774 = vst [vmem:[%s1274_s27 + $0x88] sm:$0xff] %v742_v35  ;;  %v943_v38 = vpop.f32.mrb[4].mxu0  ;;  %v959_v39 = vpop.f32.mrb[4].mxu1 }
  0xf2   : > { %v623_v40 = vadd.f32 %v943_v38, %v302_v57  ;;  %v687_v41 = vadd.f32 %v959_v39, %v382_v9  ;;  %v614_v42 = vpop.f32.mrb[5].mxu0  ;;  %v678_v43 = vpop.f32.mrb[5].mxu1 }
  0xf3   : > { %v615_v44 = vadd.f32 %v614_v42, %v1246_v55  ;;  %v679_v45 = vadd.f32 %v678_v43, %v372_v7  ;;  %v944_v46 = vpop.f32.mrb[6].mxu0  ;;  %v960_v47 = vpop.f32.mrb[6].mxu1 }
  0xf4   : > { %v731_v48 = vmax.f32 %v623_v40, 0.0  ;;  %v747_v49 = vmax.f32 %v687_v41, 0.0  ;;  %v626_v50 = vadd.f32 %v944_v46, %v1248_v56  ;;  %v690_v51 = vadd.f32 %v960_v47, %v387_v8  ;;  %v617_v52 = vpop.f32.mrb[7].mxu0  ;;  %v681_v53 = vpop.f32.mrb[7].mxu1 }
  0xf5   : > { %v729_v57 = vmax.f32 %v615_v44, 0.0  ;;  %v745_v2 = vmax.f32 %v679_v45, 0.0  ;;  %v618_v55 = vadd.f32 %v617_v52, %v1244_v54  ;;  %v682_v3 = vadd.f32 %v681_v53, %v377_v6  ;;  %v417_v8 = vpop.permute.xlu1 %416  ;;  %v412_v9 = vpop.permute.xlu0 %411 }
  0xf6   : > { %763 = vst [vmem:[%s1274_s27 + $0x30] sm:$0xff] %v731_v48  ;;  %779 = vst [vmem:[%s1274_s27 + $0xb0] sm:$0xff] %v747_v49  ;;  %v732_v4 = vmax.f32 %v626_v50, 0.0  ;;  %v748_v5 = vmax.f32 %v690_v51, 0.0 }
  0xf7   : > { %761 = vst [vmem:[%s1274_s27 + $0x20] sm:$0xff] %v729_v57  ;;  %777 = vst [vmem:[%s1274_s27 + $0xa0] sm:$0xff] %v745_v2  ;;  %v730_v7 = vmax.f32 %v618_v55, 0.0  ;;  %v746_v56 = vmax.f32 %v682_v3, 0.0 }
  0xf8   : > { %764 = vst [vmem:[%s1274_s27 + $0x38] sm:$0xff] %v732_v4  ;;  %780 = vst [vmem:[%s1274_s27 + $0xb8] sm:$0xff] %v748_v5 }
  0xf9   : > { %762 = vst [vmem:[%s1274_s27 + $0x28] sm:$0xff] %v730_v7  ;;  %778 = vst [vmem:[%s1274_s27 + $0xa8] sm:$0xff] %v746_v56  ;;  %v947_v12 = vpop.f32.mrb[8].mxu0  ;;  %v963_v13 = vpop.f32.mrb[8].mxu1 }
  0xfa   : > { %v639_v14 = vadd.f32 %v947_v12, %v1256_v61  ;;  %v703_v54 = vadd.f32 %v963_v13, %v402_v37  ;;  %v630_v6 = vpop.f32.mrb[9].mxu0  ;;  %v694_v15 = vpop.f32.mrb[9].mxu1 }
  0xfb   : > { %v631_v16 = vadd.f32 %v630_v6, %v1252_v59  ;;  %v695_v17 = vadd.f32 %v694_v15, %v1269_v11  ;;  %v948_v18 = vpop.f32.mrb[10].mxu0  ;;  %v964_v19 = vpop.f32.mrb[10].mxu1 }
  0xfc   : > { %v735_v20 = vmax.f32 %v639_v14, 0.0  ;;  %v751_v21 = vmax.f32 %v703_v54, 0.0  ;;  %v642_v22 = vadd.f32 %v948_v18, %v1254_v60  ;;  %v706_v23 = vadd.f32 %v964_v19, %v407_v36  ;;  %v633_v24 = vpop.f32.mrb[11].mxu0  ;;  %v697_v61 = vpop.f32.mrb[11].mxu1 }
  0xfd   : > { %v733_v25 = vmax.f32 %v631_v16, 0.0  ;;  %v749_v26 = vmax.f32 %v695_v17, 0.0  ;;  %v634_v59 = vadd.f32 %v633_v24, %v1250_v58  ;;  %v698_v11 = vadd.f32 %v697_v61, %v1267_v10  ;;  %v427_v30 = vpop.permute.xlu1 %426  ;;  %v422_v31 = vpop.permute.xlu0 %421 }
  0xfe   : > { %767 = vst [vmem:[%s1274_s27 + $0x50] sm:$0xff] %v735_v20  ;;  %783 = vst [vmem:[%s1274_s27 + $0xd0] sm:$0xff] %v751_v21  ;;  %v736_v27 = vmax.f32 %v642_v22, 0.0  ;;  %v752_v28 = vmax.f32 %v706_v23, 0.0 }
  0xff   : > { %765 = vst [vmem:[%s1274_s27 + $0x40] sm:$0xff] %v733_v25  ;;  %781 = vst [vmem:[%s1274_s27 + $0xc0] sm:$0xff] %v749_v26  ;;  %v734_v60 = vmax.f32 %v634_v59, 0.0  ;;  %v750_v29 = vmax.f32 %v698_v11, 0.0 }
 0x100   : > { %768 = vst [vmem:[%s1274_s27 + $0x58] sm:$0xff] %v736_v27  ;;  %784 = vst [vmem:[%s1274_s27 + $0xd8] sm:$0xff] %v752_v28 }
 0x101   : > { %766 = vst [vmem:[%s1274_s27 + $0x48] sm:$0xff] %v734_v60  ;;  %782 = vst [vmem:[%s1274_s27 + $0xc8] sm:$0xff] %v750_v29  ;;  %v951_v32 = vpop.f32.mrb[12].mxu0  ;;  %v967_v33 = vpop.f32.mrb[12].mxu1 }
 0x102   : > { %v655_v58 = vadd.f32 %v951_v32, %v1264_v1  ;;  %v719_v34 = vadd.f32 %v967_v33, %v422_v31  ;;  %v646_v10 = vpop.f32.mrb[13].mxu0  ;;  %v710_v35 = vpop.f32.mrb[13].mxu1 }
 0x103   : > { %v647_v36 = vadd.f32 %v646_v10, %v1260_v63  ;;  %v711_v37 = vadd.f32 %v710_v35, %v412_v9  ;;  %v952_v38 = vpop.f32.mrb[14].mxu0  ;;  %v968_v39 = vpop.f32.mrb[14].mxu1 }
 0x104   : > { %v739_v40 = vmax.f32 %v655_v58, 0.0  ;;  %v755_v41 = vmax.f32 %v719_v34, 0.0  ;;  %v658_v42 = vadd.f32 %v952_v38, %v1262_v0  ;;  %v722_v43 = vadd.f32 %v968_v39, %v427_v30  ;;  %v649_v1 = vpop.f32.mrb[15].mxu0  ;;  %v713_v44 = vpop.f32.mrb[15].mxu1 }
 0x105   : > { %v737_v45 = vmax.f32 %v647_v36, 0.0  ;;  %v753_v46 = vmax.f32 %v711_v37, 0.0  ;;  %v650_v63 = vadd.f32 %v649_v1, %v1258_v62  ;;  %v714_v47 = vadd.f32 %v713_v44, %v417_v8 }
 0x106   : > { %771 = vst [vmem:[%s1274_s27 + $0x70] sm:$0xff] %v739_v40  ;;  %787 = vst [vmem:[%s1274_s27 + $0xf0] sm:$0xff] %v755_v41  ;;  %v740_v48 = vmax.f32 %v658_v42, 0.0  ;;  %v756_v49 = vmax.f32 %v722_v43, 0.0 }
 0x107   : > { %769 = vst [vmem:[%s1274_s27 + $0x60] sm:$0xff] %v737_v45  ;;  %785 = vst [vmem:[%s1274_s27 + $0xe0] sm:$0xff] %v753_v46  ;;  %v738_v50 = vmax.f32 %v650_v63, 0.0  ;;  %v754_v0 = vmax.f32 %v714_v47, 0.0 }
 0x108   : > { %772 = vst [vmem:[%s1274_s27 + $0x78] sm:$0xff] %v740_v48  ;;  %788 = vst [vmem:[%s1274_s27 + $0xf8] sm:$0xff] %v756_v49 }
 0x109   : > { %770 = vst [vmem:[%s1274_s27 + $0x68] sm:$0xff] %v738_v50  ;;  %786 = vst [vmem:[%s1274_s27 + $0xe8] sm:$0xff] %v754_v0 }
 0x10a PF: > { %s13_s14 = sadd.s32 1, %s1037_s14   ;;  %s1334_s12 = smov %s1033_s13 }
 0x10b   : > { %p10_p5 = scmp.ge.s32.totalorder %s13_s14, 4   ;;  %s1335_s13 = smov %s1337_s15 }
 0x10d   :  { %12 = sbr.rel (!%p10_p5) target bundleno = 2 (0x2), region = 62 }

</bundles_post_ra>
